<compile_context>
chip_gen: v7x
topology: tpu7x:2x2x1
jax: 0.10.0
libtpu: 0.0.40
codegen_flags: <defaults>
</compile_context>

<pallas_src>
import jax
import jax.numpy as jnp
from jax.experimental import pallas as pl
from jax.experimental.pallas import tpu as pltpu


def _rotor_group_kernel(params_ref, cmds_ref, thr_ref,
                        thrust_ref, moment_ref, thr_out_ref):
    cmds = cmds_ref[...]              # [tile_rows, W]
    thr = thr_ref[...]                # [tile_rows, W]

    kf = params_ref[0:1, :]           # [1, W] broadcast over rows
    km_signed = params_ref[1:2, :]    # KM * (-directions), precomputed on host
    tau_up = params_ref[2:3, :]       # pre-clamped to [0, 1] on host
    tau_down = params_ref[3:4, :]

    # target_throttle = f_inv(clamp((cmds + 1) / 2, 0, 1)),  f_inv = sqrt
    target = jnp.sqrt(jnp.clip((cmds + 1.0) * 0.5, 0.0, 1.0))

    # tau = clamp(where(target > throttle, tau_up, tau_down), 0, 1)
    # (clamp folded on the host: tau_* are batch-invariant constants)
    tau = jnp.where(target > thr, tau_up, tau_down)

    # throttles.add_(tau * (target - throttles))
    new_thr = thr + tau * (target - thr)

    # noise = randn * noise_scale * 0.0 == 0  (omitted)
    # t = clamp(f(throttles) + noise, 0, 1),  f = square
    t = jnp.clip(new_thr * new_thr, 0.0, 1.0)

    thrust_ref[...] = t * kf
    moment_ref[...] = t * km_signed
    thr_out_ref[...] = new_thr


def _round_up(x: int, m: int) -> int:
    return ((x + m - 1) // m) * m


def _reference(cmds, throttles, KF, KM, directions, tau_up, tau_down):
    cmds = jnp.asarray(cmds, jnp.float32)
    throttles = jnp.asarray(throttles, jnp.float32)
    KF = jnp.asarray(KF, jnp.float32)
    KM = jnp.asarray(KM, jnp.float32)
    directions = jnp.asarray(directions, jnp.float32)
    tau_up = jnp.asarray(tau_up, jnp.float32)
    tau_down = jnp.asarray(tau_down, jnp.float32)

    target = jnp.sqrt(jnp.clip((cmds + 1.0) / 2.0, 0.0, 1.0))
    tau = jnp.where(target > throttles, tau_up, tau_down)
    tau = jnp.clip(tau, 0.0, 1.0)
    new_thr = throttles + tau * (target - throttles)
    t = jnp.clip(jnp.square(new_thr), 0.0, 1.0)
    return t * KF, t * KM * -directions, new_thr


def rotor_group_forward(cmds, throttles, KF, KM, directions, tau_up, tau_down,
                        *, min_pallas_elements: int = 1 << 15):
    """RotorGroup forward.

    cmds / throttles: [B, R] float. Params: [R] float.
    Returns (thrusts, moments, new_throttles), each [B, R] float32.

    For small workloads (B*R < min_pallas_elements) a fused pure-jnp path is
    used: the pallas_call launch overhead would dominate there.
    """
    B, R = cmds.shape

    if B * R < min_pallas_elements:
        return _reference(cmds, throttles, KF, KM, directions, tau_up, tau_down)

    # ---- lane packing geometry -------------------------------------------
    if R <= 128:
        R_pad = max(1, pl.next_power_of_2(R))   # power of two -> divides 128
    else:
        R_pad = _round_up(R, 128)
    PACK = max(1, 128 // R_pad)                 # batch entries packed per row
    W = PACK * R_pad                            # lane width (128 when R <= 128)

    B_pad = _round_up(B, PACK)                  # minimal batch pad (often 0)
    rows = B_pad // PACK

    # ---- tile sizing from a VMEM byte budget -------------------------------
    # 5 tensor streams (2 in, 3 out), each double-buffered, f32.
    LIVE_VMEM_BUDGET = 12 * 1024 * 1024         # < v5e's 16 MiB default limit
    bytes_per_row_live = 5 * 2 * W * 4
    max_rows_by_vmem = (LIVE_VMEM_BUDGET // bytes_per_row_live) // 8 * 8
    if max_rows_by_vmem < 8:
        # Pathologically wide R: even an 8-row tile busts the budget.
        return _reference(cmds, throttles, KF, KM, directions, tau_up, tau_down)

    tile_rows = min(2048, max_rows_by_vmem, _round_up(rows, 8))
    if rows >= 16:
        # Keep >= 2 grid blocks so the "parallel" axis can shard across the
        # two TensorCores on v7x; no-op on single-TC v5e/v6e.
        tile_rows = min(tile_rows, _round_up(pl.cdiv(rows, 2), 8))
    tile_rows = max(8, tile_rows)
    grid = (pl.cdiv(rows, tile_rows),)          # ragged last block is fine

    # ---- pack inputs (pure reshape when no padding is needed) -------------
    def pack(x):
        x = jnp.asarray(x, jnp.float32)
        if B_pad != B or R_pad != R:
            x = jnp.pad(x, ((0, B_pad - B), (0, R_pad - R)))
        return x.reshape(rows, W)

    cmds_p = pack(cmds)
    thr_p = pack(throttles)

    def lanes(v):
        v = jnp.asarray(v, jnp.float32).reshape(R)
        if R_pad != R:
            v = jnp.pad(v, (0, R_pad - R))
        return jnp.tile(v, PACK)                # [W]

    params = jnp.stack([
        lanes(KF),
        lanes(KM) * (-lanes(directions)),
        jnp.clip(lanes(tau_up), 0.0, 1.0),
        jnp.clip(lanes(tau_down), 0.0, 1.0),
    ])                                          # [4, W]

    # ---- pallas call -------------------------------------------------------
    tile_spec = pl.BlockSpec((tile_rows, W), lambda i: (i, 0))
    param_spec = pl.BlockSpec((4, W), lambda i: (0, 0))   # fetched once
    out_sds = jax.ShapeDtypeStruct((rows, W), jnp.float32)

    thrusts, moments, new_thr = pl.pallas_call(
        _rotor_group_kernel,
        out_shape=(out_sds, out_sds, out_sds),
        grid=grid,
        in_specs=[param_spec, tile_spec, tile_spec],
        out_specs=(tile_spec, tile_spec, tile_spec),
        compiler_params=pltpu.CompilerParams(
            dimension_semantics=("parallel",)),
    )(params, cmds_p, thr_p)

    # ---- unpack (pure reshape when no padding was needed) -----------------
    def unpack(y):
        y = y.reshape(B_pad, R_pad)
        if B_pad != B or R_pad != R:
            y = y[:B, :R]
        return y

    return unpack(thrusts), unpack(moments), unpack(new_thr)


if __name__ == "__main__":
    # Deterministic synthetic "rotor_config" for a quadrotor (4 rotors).
    num_rotors = 4
    force_constants = jnp.full((num_rotors,), 7.24e-10, jnp.float32)
    moment_constants = jnp.full((num_rotors,), 1.1e-11, jnp.float32)
    max_rot_vels = jnp.full((num_rotors,), 4720.0, jnp.float32)
    directions = jnp.array([1.0, -1.0, 1.0, -1.0], jnp.float32)

    KF = jnp.square(max_rot_vels) * force_constants
    KM = jnp.square(max_rot_vels) * moment_constants
    tau_up = 0.43 * jnp.ones((num_rotors,), jnp.float32)
    tau_down = 0.43 * jnp.ones((num_rotors,), jnp.float32)

    key = jax.random.PRNGKey(0)
    ok = True
    # (batch, threshold): small cases force the Pallas path (ragged / padded
    # batch), the larger case uses the default threshold and a 2-block grid.
    for batch, thresh in ((8, 0), (300, 0), (8192, 1 << 15)):
        key, k1, k2 = jax.random.split(key, 3)
        cmds = jax.random.uniform(k1, (batch, num_rotors), jnp.float32,
                                  minval=-1.0, maxval=1.0)
        throttles = jax.random.uniform(k2, (batch, num_rotors), jnp.float32,
                                       minval=0.0, maxval=1.0)

        out = rotor_group_forward(cmds, throttles, KF, KM,
                                  directions, tau_up, tau_down,
                                  min_pallas_elements=thresh)
        jax.block_until_ready(out)

        ref = _reference(cmds, throttles, KF, KM, directions, tau_up, tau_down)
        for a, b in zip(out, ref):
            ok &= bool(a.shape == b.shape)
            ok &= bool(jnp.allclose(a, b, rtol=1e-5, atol=1e-6))

    assert ok
    print("KERNEL_OK")
</pallas_src>

<mosaic_0001>
module attributes {stable_mosaic.version = 11 : i64} {
  func.func @_rotor_group_kernel(%arg0: i32, %arg1: memref<4x128xf32, #tpu.memory_space<vmem>>, %arg2: memref<8x128xf32, #tpu.memory_space<vmem>>, %arg3: memref<8x128xf32, #tpu.memory_space<vmem>>, %arg4: memref<8x128xf32, #tpu.memory_space<vmem>>, %arg5: memref<8x128xf32, #tpu.memory_space<vmem>>, %arg6: memref<8x128xf32, #tpu.memory_space<vmem>>) attributes {dimension_semantics = [#tpu.dimension_semantics<parallel>], iteration_bounds = array<i64: 1>, scalar_prefetch = 0 : i64, scratch_operands = 0 : i64, tpu.core_type = #tpu.core_type<tc>, window_params = [{pipeline_mode = #tpu.pipeline_mode<synchronous>, transform_indices = @transform_0, window_bounds = array<i64: 4, 128>}, {transform_indices = @transform_1, window_bounds = array<i64: 8, 128>}, {transform_indices = @transform_2, window_bounds = array<i64: 8, 128>}, {transform_indices = @transform_3, window_bounds = array<i64: 8, 128>}, {transform_indices = @transform_4, window_bounds = array<i64: 8, 128>}, {transform_indices = @transform_5, window_bounds = array<i64: 8, 128>}]} {
    %c0 = arith.constant 0 : index
    %c0_0 = arith.constant 0 : index
    %0 = vector.load %arg2[%c0, %c0_0] : memref<8x128xf32, #tpu.memory_space<vmem>>, vector<8x128xf32>
    %c0_1 = arith.constant 0 : index
    %c0_2 = arith.constant 0 : index
    %1 = vector.load %arg3[%c0_1, %c0_2] : memref<8x128xf32, #tpu.memory_space<vmem>>, vector<8x128xf32>
    %c0_3 = arith.constant 0 : index
    %c0_4 = arith.constant 0 : index
    %2 = vector.load %arg1[%c0_3, %c0_4] : memref<4x128xf32, #tpu.memory_space<vmem>>, vector<1x128xf32>
    %c1 = arith.constant 1 : index
    %c0_5 = arith.constant 0 : index
    %3 = vector.load %arg1[%c1, %c0_5] : memref<4x128xf32, #tpu.memory_space<vmem>>, vector<1x128xf32>
    %c2 = arith.constant 2 : index
    %c0_6 = arith.constant 0 : index
    %4 = vector.load %arg1[%c2, %c0_6] : memref<4x128xf32, #tpu.memory_space<vmem>>, vector<1x128xf32>
    %c3 = arith.constant 3 : index
    %c0_7 = arith.constant 0 : index
    %5 = vector.load %arg1[%c3, %c0_7] : memref<4x128xf32, #tpu.memory_space<vmem>>, vector<1x128xf32>
    %cst = arith.constant 1.000000e+00 : f32
    %6 = vector.broadcast %cst : f32 to vector<8x128xf32>
    %7 = arith.addf %0, %6 : vector<8x128xf32>
    %cst_8 = arith.constant 5.000000e-01 : f32
    %8 = vector.broadcast %cst_8 : f32 to vector<8x128xf32>
    %9 = arith.mulf %7, %8 : vector<8x128xf32>
    %cst_9 = arith.constant 0.000000e+00 : f32
    %cst_10 = arith.constant 1.000000e+00 : f32
    %10 = vector.broadcast %cst_9 : f32 to vector<8x128xf32>
    %11 = arith.maximumf %10, %9 : vector<8x128xf32>
    %12 = vector.broadcast %cst_10 : f32 to vector<8x128xf32>
    %13 = arith.minimumf %12, %11 : vector<8x128xf32>
    %14 = math.sqrt %13 : vector<8x128xf32>
    %15 = arith.cmpf ogt, %14, %1 : vector<8x128xf32>
    %16 = vector.shape_cast %4 : vector<1x128xf32> to vector<1x128xf32>
    %17 = vector.broadcast %16 : vector<1x128xf32> to vector<8x128xf32>
    %18 = vector.shape_cast %5 : vector<1x128xf32> to vector<1x128xf32>
    %19 = vector.broadcast %18 : vector<1x128xf32> to vector<8x128xf32>
    %20 = arith.select %15, %17, %19 : vector<8x128xi1>, vector<8x128xf32>
    %21 = arith.subf %14, %1 : vector<8x128xf32>
    %22 = arith.mulf %20, %21 : vector<8x128xf32>
    %23 = arith.addf %1, %22 : vector<8x128xf32>
    %24 = arith.mulf %23, %23 : vector<8x128xf32>
    %cst_11 = arith.constant 0.000000e+00 : f32
    %cst_12 = arith.constant 1.000000e+00 : f32
    %25 = vector.broadcast %cst_11 : f32 to vector<8x128xf32>
    %26 = arith.maximumf %25, %24 : vector<8x128xf32>
    %27 = vector.broadcast %cst_12 : f32 to vector<8x128xf32>
    %28 = arith.minimumf %27, %26 : vector<8x128xf32>
    %29 = vector.broadcast %2 : vector<1x128xf32> to vector<8x128xf32>
    %30 = arith.mulf %28, %29 : vector<8x128xf32>
    %c0_13 = arith.constant 0 : index
    %c0_14 = arith.constant 0 : index
    %31 = vector.load %arg4[%c0_13, %c0_14] : memref<8x128xf32, #tpu.memory_space<vmem>>, vector<8x128xf32>
    tpu.vector_store %arg4[%c0_13, %c0_14], %30 {strides = array<i32>} : memref<8x128xf32, #tpu.memory_space<vmem>>, vector<8x128xf32>,
    %32 = vector.broadcast %3 : vector<1x128xf32> to vector<8x128xf32>
    %33 = arith.mulf %28, %32 : vector<8x128xf32>
    %c0_15 = arith.constant 0 : index
    %c0_16 = arith.constant 0 : index
    %34 = vector.load %arg5[%c0_15, %c0_16] : memref<8x128xf32, #tpu.memory_space<vmem>>, vector<8x128xf32>
    tpu.vector_store %arg5[%c0_15, %c0_16], %33 {strides = array<i32>} : memref<8x128xf32, #tpu.memory_space<vmem>>, vector<8x128xf32>,
    %c0_17 = arith.constant 0 : index
    %c0_18 = arith.constant 0 : index
    %35 = vector.load %arg6[%c0_17, %c0_18] : memref<8x128xf32, #tpu.memory_space<vmem>>, vector<8x128xf32>
    tpu.vector_store %arg6[%c0_17, %c0_18], %23 {strides = array<i32>} : memref<8x128xf32, #tpu.memory_space<vmem>>, vector<8x128xf32>,
    return
  }
  func.func @transform_0(%arg0: i32) -> (i32, i32) {
    %c0_i32 = arith.constant 0 : i32
    %c0_i32_0 = arith.constant 0 : i32
    %c0_i32_1 = arith.constant 0 : i32
    return %c0_i32, %c0_i32_0 : i32, i32
  }
  func.func @transform_1(%arg0: i32) -> (i32, i32) {
    %c0_i32 = arith.constant 0 : i32
    %c0_i32_0 = arith.constant 0 : i32
    return %arg0, %c0_i32 : i32, i32
  }
  func.func @transform_2(%arg0: i32) -> (i32, i32) {
    %c0_i32 = arith.constant 0 : i32
    %c0_i32_0 = arith.constant 0 : i32
    return %arg0, %c0_i32 : i32, i32
  }
  func.func @transform_3(%arg0: i32) -> (i32, i32) {
    %c0_i32 = arith.constant 0 : i32
    %c0_i32_0 = arith.constant 0 : i32
    return %arg0, %c0_i32 : i32, i32
  }
  func.func @transform_4(%arg0: i32) -> (i32, i32) {
    %c0_i32 = arith.constant 0 : i32
    %c0_i32_0 = arith.constant 0 : i32
    return %arg0, %c0_i32 : i32, i32
  }
  func.func @transform_5(%arg0: i32) -> (i32, i32) {
    %c0_i32 = arith.constant 0 : i32
    %c0_i32_0 = arith.constant 0 : i32
    return %arg0, %c0_i32 : i32, i32
  }
}

</mosaic_0001>

<bundles_post_ra>
// kernel: tpu_custom_call.1
= control target key start
LH: loop header
LB: loop body
LE: loop exit
PB: predicated region body
PF: predicated region fallthrough
CT: control target
= control target key end

     0   :  { %11 = vsyncpa [#allocation3], 0  ;;  %s330_s0 = inlined_call_operand.hbm [shape: f32[4,128], index: 0, kind: input, shape index: {}]   ;;  %s331_s1 = inlined_call_operand.vmem [shape: f32[1,128], index: 1, kind: input, shape index: {}]   ;;  %s332_s2 = inlined_call_operand.vmem [shape: f32[1,128], index: 2, kind: input, shape index: {}]   ;;  %s333_s3 = inlined_call_operand.hbm [shape: f32[1,128], index: 3, kind: output, shape index: {0}]   ;;  %s334_s4 = inlined_call_operand.hbm [shape: f32[1,128], index: 4, kind: output, shape index: {1}]   ;;  %s335_s5 = inlined_call_operand.hbm [shape: f32[1,128], index: 5, kind: output, shape index: {2}]  }
   0x1   :  { %12 = vsyncpa [#allocation4], 0 }
   0x2   :  { %13 = vsyncpa [#allocation7], 0  ;;  %s231_s18 = smov [#allocation2]   ;;  %s137_s22 = scalar_lea.hbm %s330_s0, 64 }
   0x3   :  { %s20_s19 = sshll.u32 %s231_s18, 4  ;;  %p138_p0 = scmp.ne.s32.totalorder %s330_s0, %s137_s22  ;;  %s21_s19 = int_to_ptr.vmem [resolvable:$true] %s20_s19 }
   0x4   :  { %p141_p1 = scmp.lt.u32.totalorder %s137_s22, %s330_s0 }
   0x6   :  { %p143_p2 = pnand %p141_p1, %p138_p0 }
   0x8   :  { %146 = shalt.err (!%p143_p2)
}
   0x9   :  { %s147_s27 = scalar_lea.vmem %s21_s19, 64  ;;  %p152_p4 = scmp.lt.s32.totalorder %s21_s19, %s21_s19 }
   0xa   :  { %p148_p3 = scmp.ne.s32.totalorder %s21_s19, %s147_s27  ;;  %p153_p5 = scmp.lt.s32.totalorder %s147_s27, %s147_s27 }
   0xc   :  { %p154_p6 = por %p153_p5, %p152_p4 }
   0xe   :  { %p155_p7 = pnand %p154_p6, %p148_p3 }
  0x10   :  { %158 = shalt.err (!%p155_p7)
}
  0x11   :  { %23 = dma.hbm_to_vmem [thread:$0]  %s330_s0, 64, %s21_s19, [#allocation3]  }
  0x12   :  { %225 = dma.done.wait [#allocation3], 64  }
  0x13   :  { %226 = vsyncadd [#allocation3], 4294967232  ;;  %v31_v0 = vld [vmem:[%s331_s1] sm:$0xff] }
  0x14   :  { %v37_v1 = vadd.f32 1.0, %v31_v0  ;;  %v32_v8 = vld [vmem:[%s332_s2] sm:$0xff] }
  0x15   :  { %v125_v9 = vld [vmem:[#allocation2 + $0x2] ss:$0 sm:$0xff]  ;;  %v126_v10 = vld [vmem:[#allocation2 + $0x3] ss:$0 sm:$0xff]  ;;  %v127_v19 = vld [vmem:[#allocation2] ss:$0 sm:$0xff] }
  0x16   :  { %v38_v2 = vmul.f32 0.5, %v37_v1  ;;  %v128_v20 = vld [vmem:[#allocation2 + $0x1] ss:$0 sm:$0xff] }
  0x18   :  { %v39_v3 = vmax.f32 %v38_v2, 0.0 }
  0x1a   :  { %v40_v4 = vmin.f32 %v39_v3, 1.0 }
  0x1c   :  { %135 = vrsqrt.f32 %v40_v4  ;;  %vm43_vm0 = vcmp.eq.f32.partialorder %v40_v4, inf  ;;  %v46_v6 = vand.u32 2147483648, %v40_v4  ;;  %vm45_vm1 = vcmp.eq.f32.partialorder %v40_v4, 0.0 }
  0x26   :  { %v136_v5 = vpop.eup %135 }
  0x27   :  { %v42_v7 = vmul.f32 %v136_v5, %v40_v4 }
  0x29   :  { %v44_v11 = vsel %vm43_vm0, %v40_v4, %v42_v7 }
  0x2a   :  { %v47_v12 = vsel %vm45_vm1, %v46_v6, %v44_v11 }
  0x2b   :  { %vm48_vm2 = vcmp.gt.f32.partialorder %v47_v12, %v32_v8  ;;  %v58_v13 = vsub.f32 %v47_v12, %v32_v8 }
  0x2c   :  { %v57_v14 = vsel %vm48_vm2, %v125_v9, %v126_v10 }
  0x2d   :  { %v59_v15 = vmul.f32 %v58_v13, %v57_v14 }
  0x2f   :  { %v60_v16 = vadd.f32 %v59_v15, %v32_v8 }
  0x31   :  { %v61_v17 = vmul.f32 %v60_v16, %v60_v16  ;;  %76 = vst [vmem:[#allocation8] sm:$0xff] %v60_v16 }
  0x33   :  { %v62_v18 = vmax.f32 %v61_v17, 0.0 }
  0x35   :  { %v63_v21 = vmin.f32 %v62_v18, 1.0 }
  0x37   :  { %v68_v22 = vmul.f32 %v127_v19, %v63_v21  ;;  %v74_v23 = vmul.f32 %v128_v20, %v63_v21 }
  0x39   :  { %69 = vst [vmem:[#allocation5] sm:$0xff] %v68_v22  ;;  %75 = vst [vmem:[#allocation6] sm:$0xff] %v74_v23 }
  0x3a   :  { %81 = vsyncadd [#allocation4], 112  ;;  %s232_s0 = smov [#allocation5]  }
  0x3b   :  { %s82_s1 = sshll.u32 %s232_s0, 4  ;;  %s83_s1 = int_to_ptr.vmem [resolvable:$true] %s82_s1 }
  0x3c   :  { %s159_s2 = scalar_lea.vmem %s83_s1, 16  ;;  %s163_s9 = scalar_lea.vmem %s83_s1, 128 }
  0x3d   :  { %p160_p8 = scmp.ne.s32.totalorder %s83_s1, %s159_s2  ;;  %p164_p9 = scmp.lt.s32.totalorder %s83_s1, %s83_s1 }
  0x3e   :  { %p165_p10 = scmp.lt.s32.totalorder %s163_s9, %s159_s2 }
  0x40   :  { %p166_p11 = por %p165_p10, %p164_p9 }
  0x42   :  { %p167_p12 = pnand %p166_p11, %p160_p8 }
  0x44   :  { %170 = shalt.err (!%p167_p12)
}
  0x45   :  { %s171_s12 = scalar_lea.hbm %s333_s3, 16 }
  0x46   :  { %p172_p13 = scmp.ne.s32.totalorder %s333_s3, %s171_s12  ;;  %p175_p0 = scmp.lt.u32.totalorder %s171_s12, %s333_s3 }
  0x48   :  { %p177_p1 = pnand %p175_p0, %p172_p13 }
  0x4a   :  { %180 = shalt.err (!%p177_p1)
}
  0x4b   :  { %s233_s17 = smov 16   ;;  %s234_s18 = smov 1  }
  0x4c   :  { %88 = dma.vmem_to_hbm [thread:$0]  %s83_s1, 16, %s333_s3, [#allocation4], %s233_s17, %s233_s17, %s234_s18  }
  0x4d   :  { %93 = vsyncadd [#allocation7], 112  ;;  %s235_s21 = smov [#allocation6]  }
  0x4e   :  { %s94_s22 = sshll.u32 %s235_s21, 4  ;;  %s95_s22 = int_to_ptr.vmem [resolvable:$true] %s94_s22 }
  0x4f   :  { %s181_s23 = scalar_lea.vmem %s95_s22, 16  ;;  %s185_s24 = scalar_lea.vmem %s95_s22, 128 }
  0x50   :  { %p182_p2 = scmp.ne.s32.totalorder %s95_s22, %s181_s23  ;;  %p186_p3 = scmp.lt.s32.totalorder %s95_s22, %s95_s22 }
  0x51   :  { %p187_p4 = scmp.lt.s32.totalorder %s185_s24, %s181_s23 }
  0x53   :  { %p188_p5 = por %p187_p4, %p186_p3 }
  0x55   :  { %p189_p6 = pnand %p188_p5, %p182_p2 }
  0x57   :  { %192 = shalt.err (!%p189_p6)
}
  0x58   :  { %s193_s27 = scalar_lea.hbm %s334_s4, 16 }
  0x59   :  { %p194_p7 = scmp.ne.s32.totalorder %s334_s4, %s193_s27  ;;  %p197_p8 = scmp.lt.u32.totalorder %s193_s27, %s334_s4 }
  0x5b   :  { %p199_p9 = pnand %p197_p8, %p194_p7 }
  0x5d   :  { %202 = shalt.err (!%p199_p9)
}
  0x5e   :  { %100 = dma.vmem_to_hbm [thread:$0]  %s95_s22, 16, %s334_s4, [#allocation7], %s233_s17, %s233_s17, %s234_s18  }
  0x5f   :  { %105 = vsyncadd [#allocation7], 112  ;;  %s236_s8 = smov [#allocation8]  }
  0x60   :  { %s106_s0 = sshll.u32 %s236_s8, 4  ;;  %s107_s0 = int_to_ptr.vmem [resolvable:$true] %s106_s0 }
  0x61   :  { %s203_s1 = scalar_lea.vmem %s107_s0, 16  ;;  %s207_s2 = scalar_lea.vmem %s107_s0, 128 }
  0x62   :  { %p204_p10 = scmp.ne.s32.totalorder %s107_s0, %s203_s1  ;;  %p208_p11 = scmp.lt.s32.totalorder %s107_s0, %s107_s0 }
  0x63   :  { %p209_p12 = scmp.lt.s32.totalorder %s207_s2, %s203_s1 }
  0x65   :  { %p210_p13 = por %p209_p12, %p208_p11 }
  0x67   :  { %p211_p0 = pnand %p210_p13, %p204_p10 }
  0x69   :  { %214 = shalt.err (!%p211_p0)
}
  0x6a   :  { %s215_s11 = scalar_lea.hbm %s335_s5, 16 }
  0x6b   :  { %p216_p1 = scmp.ne.s32.totalorder %s335_s5, %s215_s11  ;;  %p219_p2 = scmp.lt.u32.totalorder %s215_s11, %s335_s5 }
  0x6d   :  { %p221_p3 = pnand %p219_p2, %p216_p1 }
  0x6f   :  { %224 = shalt.err (!%p221_p3)
}
  0x70   :  { %112 = dma.vmem_to_hbm [thread:$0]  %s107_s0, 16, %s335_s5, [#allocation7], %s233_s17, %s233_s17, %s234_s18  }
  0x71   :  { %227 = dma.done.wait [#allocation4], 128  }
  0x72   :  { %228 = vsyncadd [#allocation4], 4294967168 }
  0x73   :  { %229 = dma.done.wait [#allocation7], 256  }
  0x74   :  { %230 = vsyncadd [#allocation7], 4294967040 }
  0x75   :  { %122 = vsyncpa [#allocation3], 1 }
  0x76   :  { %123 = vsyncpa [#allocation4], 1 }
  0x77   :  { %124 = vsyncpa [#allocation7], 1 }

</bundles_post_ra>
